<compile_context>
chip_gen: v5e
topology: v5e:2x2
jax: 0.10.0
libtpu: 0.0.40
codegen_flags: <defaults>
</compile_context>

<pallas_src>
import functools

import jax
import jax.numpy as jnp
import numpy as np
from jax.experimental import pallas as pl
from jax.experimental.pallas import tpu as pltpu

_LANE = 128                                   # lane width / feature padding
_VMEM_RESIDENT_BUDGET = 40 * 1024 * 1024      # conservative vs v7x 64 MiB VMEM


def _round_up(x, m):
    return (x + m - 1) // m * m


def _pick_tiles(n):
    """Tile sizes for the (rows, contraction) grid.

    256 fills the v6e/v7x 256x256 MXU and amortizes per-grid-step overhead;
    128 for small graphs keeps >= 2 row tiles so the "parallel" axis can feed
    both v7x TensorCores (and is MXU-native on v5e's 128x128 arrays anyway).
    """
    if n > 512:
        return 256, 256
    return 128, 128


def _vmem_bytes(n_pad, d, h, tm, tk, resident):
    """Rough per-call VMEM footprint (double-buffered streams counted twice)."""
    adj = 2 * tm * tk * 2                       # bf16 adjacency tiles
    out = 2 * tm * h * 4                        # f32 output tiles
    acc = tm * d * 4                            # f32 accumulator scratch
    wb = 2 * (d * h * 4 + h * 4)                # W + bias (grid-invariant)
    if resident:
        feat = 2 * n_pad * d * 4                # resident f32 feature matrix
    else:
        feat = 2 * tk * d * 2                   # streamed bf16 feature tiles
    return adj + out + acc + wb + feat


# ----------------------------- Pallas kernel --------------------------------

def _gin_layer_kernel(adj_ref, feat_ref, w_ref, b_ref, out_ref, acc_ref,
                      *, relu_input, resident, tk):
    """One fused GINConv('sum') + Linear layer for one row tile.

    grid = (rows, k):
      acc[rows] = sum_k A'[rows, k] @ feat[k]         (A' has (1+eps) on diag)
      last k:     out[rows] = acc[rows] @ W + b
    If relu_input, ReLU is applied to the loaded feature slice (fuses the
    inter-layer F.relu without an extra HBM pass).
    """
    k = pl.program_id(1)

    @pl.when(k == 0)
    def _():
        acc_ref[...] = jnp.zeros_like(acc_ref)

    if resident:
        start = pl.multiple_of(k * tk, tk)
        f = feat_ref[pl.ds(start, tk), :]
    else:
        f = feat_ref[...]
    if relu_input:
        f = jnp.maximum(f, 0.0)

    # native bf16 MXU matmul (adjacency already bf16), f32 accumulation
    acc_ref[...] += jnp.dot(adj_ref[...], f.astype(jnp.bfloat16),
                            preferred_element_type=jnp.float32)

    @pl.when(k == pl.num_programs(1) - 1)
    def _():
        y = jnp.dot(acc_ref[...], w_ref[...],
                    preferred_element_type=jnp.float32) + b_ref[...]
        out_ref[...] = y.astype(out_ref.dtype)


# ----------------------------- wrapper ---------------------------------------

def gin_conv(adj_bf16, feat, w, b, *, relu_input, tm, tk, resident):
    """Fused GINConv('sum') + Linear.  All shapes pre-padded to tile multiples.

    `adj_bf16` must already contain the (1 + eps) self term on its diagonal.
    """
    n_pad, d = feat.shape
    h = w.shape[1]
    assert n_pad % tm == 0 and n_pad % tk == 0
    assert d % _LANE == 0 and h % _LANE == 0

    if resident:
        # full-array, grid-invariant spec: DMA'd into VMEM once, sliced in-kernel
        feat_spec = pl.BlockSpec((n_pad, d), lambda i, k: (0, 0))
    else:
        # streaming fallback (very large N): per-k bf16 tiles
        feat_spec = pl.BlockSpec((tk, d), lambda i, k: (k, 0))

    est = _vmem_bytes(n_pad, d, h, tm, tk, resident)
    vmem_limit = int(min(60 * 2**20, max(32 * 2**20, int(1.3 * est))))

    kern = functools.partial(_gin_layer_kernel, relu_input=relu_input,
                             resident=resident, tk=tk)
    return pl.pallas_call(
        kern,
        out_shape=jax.ShapeDtypeStruct((n_pad, h), jnp.float32),
        grid=(n_pad // tm, n_pad // tk),
        in_specs=[
            pl.BlockSpec((tm, tk), lambda i, k: (i, k)),   # adjacency tile (bf16)
            feat_spec,                                     # neighbor features
            pl.BlockSpec((d, h), lambda i, k: (0, 0)),     # W (VMEM-resident)
            pl.BlockSpec((1, h), lambda i, k: (0, 0)),     # bias
        ],
        out_specs=pl.BlockSpec((tm, h), lambda i, k: (i, 0)),
        scratch_shapes=[pltpu.VMEM((tm, d), jnp.float32)],
        compiler_params=pltpu.CompilerParams(
            dimension_semantics=("parallel", "arbitrary"),
            vmem_limit_bytes=vmem_limit),
    )(adj_bf16, feat, w, b)


# ----------------------------- model ------------------------------------------

class GINPallas:
    """Inference replica of GIN (two GINConv('sum') + Linear layers)."""

    def __init__(self, d_data, h_dims, n_cls, *, dropout=0.0, eps=0.0, key=None):
        dims = [d_data] + list(h_dims) + [n_cls]
        self.dims = dims
        self.eps = eps            # GINConv init_eps (DGL default 0, fixed)
        self.dropout = dropout    # stored like the reference; unused in forward
        key = jax.random.PRNGKey(0) if key is None else key

        self.weights, self.biases = [], []
        for l in range(len(dims) - 1):
            key, kw, kb = jax.random.split(key, 3)
            fan_in, fan_out = dims[l], dims[l + 1]
            bound = 1.0 / float(np.sqrt(fan_in))
            # stored [in, out] so kernels compute x @ W (== x @ W_torch.T)
            self.weights.append(jax.random.uniform(
                kw, (fan_in, fan_out), jnp.float32, -bound, bound))
            self.biases.append(jax.random.uniform(
                kb, (1, fan_out), jnp.float32, -bound, bound))
        self.second_last_h = None
        self._adj_cache = None
        self._adj_cache_src = None

    def _padded_params(self, l):
        w, b = self.weights[l], self.biases[l]
        d_pad = _round_up(w.shape[0], _LANE)
        h_pad = _round_up(w.shape[1], _LANE)
        w_p = jnp.zeros((d_pad, h_pad), jnp.float32)
        w_p = w_p.at[:w.shape[0], :w.shape[1]].set(w)
        b_p = jnp.zeros((1, h_pad), jnp.float32).at[:, :b.shape[1]].set(b)
        return w_p, b_p

    def _prepare_graph(self, adj):
        """Pad, fold (1+eps)*I into the diagonal, cast to bf16 — built once."""
        if self._adj_cache is not None and self._adj_cache_src is adj:
            return self._adj_cache
        N = adj.shape[0]
        tm, tk = _pick_tiles(N)
        n_pad = _round_up(N, max(tm, tk))
        a = jnp.asarray(adj, jnp.float32)
        # fold the (1 + eps) * feat self term into the adjacency diagonal
        # (exact in bf16 for 0/1 adjacency with eps == 0)
        a = a + (1.0 + self.eps) * jnp.eye(N, dtype=jnp.float32)
        adj_p = jnp.zeros((n_pad, n_pad), jnp.bfloat16)
        adj_p = adj_p.at[:N, :N].set(a.astype(jnp.bfloat16))
        adj_p = jax.block_until_ready(adj_p)
        self._adj_cache_src = adj
        self._adj_cache = (adj_p, N, n_pad, tm, tk)
        return self._adj_cache

    def __call__(self, adj, features):
        adj_p, N, n_pad, tm, tk = self._prepare_graph(adj)
        assert features.shape[0] == N

        d0_pad = _round_up(self.dims[0], _LANE)
        x = jnp.zeros((n_pad, d0_pad), jnp.float32)
        x = x.at[:N, :self.dims[0]].set(features.astype(jnp.float32))

        e_list = []

        # layer 0: GINConv -> pre-activation hidden h (= second_last_h)
        w0, b0 = self._padded_params(0)
        res0 = _vmem_bytes(n_pad, w0.shape[0], w0.shape[1],
                           tm, tk, True) <= _VMEM_RESIDENT_BUDGET
        x_in = x if res0 else x.astype(jnp.bfloat16)
        h = gin_conv(adj_p, x_in, w0, b0, relu_input=False,
                     tm=tm, tk=tk, resident=res0)

        # layer 1: GINConv on relu(h); the ReLU is fused into this kernel
        w1, b1 = self._padded_params(1)
        res1 = _vmem_bytes(n_pad, w1.shape[0], w1.shape[1],
                           tm, tk, True) <= _VMEM_RESIDENT_BUDGET
        h_in = h if res1 else h.astype(jnp.bfloat16)
        logits_p = gin_conv(adj_p, h_in, w1, b1, relu_input=True,
                            tm=tm, tk=tk, resident=res1)

        self.second_last_h = h[:N, :self.dims[1]]
        logits = logits_p[:N, :self.dims[-1]]
        # TODO(synk): custom GINConv edge-coefficient list `e` (TWP attention)
        # has no reference here; returning the empty e_list (twp-disabled path).
        return logits, e_list


# ----------------------------- main -------------------------------------------

if __name__ == "__main__":
    key = jax.random.PRNGKey(0)
    k_adj, k_feat, k_par = jax.random.split(key, 3)

    N = 200          # number of graph nodes (padded to 256 internally)
    D_DATA = 48      # input feature dim      (padded to 128)
    H_DIMS = [64]    # hidden dim             (padded to 128)
    N_CLS = 7        # number of classes      (padded to 128, sliced back)

    # deterministic random directed graph, A[dst, src]
    adj = (jax.random.uniform(k_adj, (N, N)) < 0.05).astype(jnp.float32)

    feats = jax.random.normal(k_feat, (N, D_DATA), dtype=jnp.float32)

    model = GINPallas(D_DATA, H_DIMS, N_CLS, dropout=0.5, key=k_par)
    logits, e_list = model(adj, feats)
    logits = jax.block_until_ready(logits)

    # pure reference (float64 on host)
    A = np.asarray(adj, dtype=np.float64)
    X = np.asarray(feats, dtype=np.float64)
    W0 = np.asarray(model.weights[0], dtype=np.float64)
    B0 = np.asarray(model.biases[0], dtype=np.float64)
    W1 = np.asarray(model.weights[1], dtype=np.float64)
    B1 = np.asarray(model.biases[1], dtype=np.float64)
    h_ref = (X + A @ X) @ W0 + B0
    x1_ref = np.maximum(h_ref, 0.0)
    logits_ref = (x1_ref + A @ x1_ref) @ W1 + B1

    assert logits.shape == (N, N_CLS)
    assert logits.dtype == jnp.float32
    assert e_list == []
    np.testing.assert_allclose(np.asarray(logits, dtype=np.float64), logits_ref,
                               rtol=5e-2, atol=5e-2)
    sl = np.asarray(model.second_last_h, dtype=np.float64)
    np.testing.assert_allclose(sl, h_ref, rtol=5e-2, atol=5e-2)
    print("KERNEL_OK")
</pallas_src>

<mosaic_0001>
module attributes {stable_mosaic.version = 11 : i64} {
  func.func @_gin_layer_kernel(%arg0: i32, %arg1: i32, %arg2: memref<128x128xbf16, #tpu.memory_space<vmem>>, %arg3: memref<256x128xf32, #tpu.memory_space<vmem>>, %arg4: memref<128x128xf32, #tpu.memory_space<vmem>>, %arg5: memref<1x128xf32, #tpu.memory_space<vmem>>, %arg6: memref<128x128xf32, #tpu.memory_space<vmem>>, %arg7: memref<128x128xf32, #tpu.memory_space<vmem>>) attributes {dimension_semantics = [#tpu.dimension_semantics<parallel>, #tpu.dimension_semantics<arbitrary>], iteration_bounds = array<i64: 2, 2>, scalar_prefetch = 0 : i64, scratch_operands = 1 : i64, tpu.core_type = #tpu.core_type<tc>, window_params = [{transform_indices = @transform_0, window_bounds = array<i64: 128, 128>}, {pipeline_mode = #tpu.pipeline_mode<synchronous>, transform_indices = @transform_1, window_bounds = array<i64: 256, 128>}, {pipeline_mode = #tpu.pipeline_mode<synchronous>, transform_indices = @transform_2, window_bounds = array<i64: 128, 128>}, {pipeline_mode = #tpu.pipeline_mode<synchronous>, transform_indices = @transform_3, window_bounds = array<i64: 1, 128>}, {transform_indices = @transform_4, window_bounds = array<i64: 128, 128>}]} {
    %c0_i32 = arith.constant 0 : i32
    %0 = arith.cmpi eq, %arg1, %c0_i32 : i32
    %1 = arith.extui %0 : i1 to i32
    %c0_i32_0 = arith.constant 0 : i32
    %2 = arith.cmpi ne, %1, %c0_i32_0 : i32
    scf.if %2 {
      %cst_8 = arith.constant 0.000000e+00 : f32
      %16 = vector.broadcast %cst_8 : f32 to vector<128x128xf32>
      %c0_9 = arith.constant 0 : index
      %c0_10 = arith.constant 0 : index
      %17 = vector.load %arg7[%c0_9, %c0_10] : memref<128x128xf32, #tpu.memory_space<vmem>>, vector<128x128xf32>
      tpu.vector_store %arg7[%c0_9, %c0_10], %16 {strides = array<i32>} : memref<128x128xf32, #tpu.memory_space<vmem>>, vector<128x128xf32>,
    } else {
    }
    %c128_i32 = arith.constant 128 : i32
    %3 = arith.muli %arg1, %c128_i32 : i32
    %4 = tpu.assume_multiple %3, 128 : i32
    %5 = arith.index_cast %4 : i32 to index
    %c0 = arith.constant 0 : index
    %6 = vector.load %arg3[%5, %c0] : memref<256x128xf32, #tpu.memory_space<vmem>>, vector<128x128xf32>
    %c0_1 = arith.constant 0 : index
    %c0_2 = arith.constant 0 : index
    %7 = vector.load %arg7[%c0_1, %c0_2] : memref<128x128xf32, #tpu.memory_space<vmem>>, vector<128x128xf32>
    %c0_3 = arith.constant 0 : index
    %c0_4 = arith.constant 0 : index
    %8 = vector.load %arg2[%c0_3, %c0_4] : memref<128x128xbf16, #tpu.memory_space<vmem>>, vector<128x128xbf16>
    %9 = arith.truncf %6 : vector<128x128xf32> to vector<128x128xbf16>
    %cst = arith.constant dense<0.000000e+00> : vector<128x128xf32>
    %10 = tpu.matmul %8, %9, %cst {dimension_numbers = #tpu.dot_dimension_numbers<[1], [0], [0], [1], [0, 0, 1, 1], [], []>} : vector<128x128xbf16>, vector<128x128xbf16>, vector<128x128xf32> -> vector<128x128xf32>
    %11 = arith.addf %7, %10 : vector<128x128xf32>
    %c0_5 = arith.constant 0 : index
    %c0_6 = arith.constant 0 : index
    %12 = vector.load %arg7[%c0_5, %c0_6] : memref<128x128xf32, #tpu.memory_space<vmem>>, vector<128x128xf32>
    tpu.vector_store %arg7[%c0_5, %c0_6], %11 {strides = array<i32>} : memref<128x128xf32, #tpu.memory_space<vmem>>, vector<128x128xf32>,
    %c1_i32 = arith.constant 1 : i32
    %13 = arith.cmpi eq, %arg1, %c1_i32 : i32
    %14 = arith.extui %13 : i1 to i32
    %c0_i32_7 = arith.constant 0 : i32
    %15 = arith.cmpi ne, %14, %c0_i32_7 : i32
    scf.if %15 {
      %c0_8 = arith.constant 0 : index
      %c0_9 = arith.constant 0 : index
      %16 = vector.load %arg7[%c0_8, %c0_9] : memref<128x128xf32, #tpu.memory_space<vmem>>, vector<128x128xf32>
      %c0_10 = arith.constant 0 : index
      %c0_11 = arith.constant 0 : index
      %17 = vector.load %arg4[%c0_10, %c0_11] : memref<128x128xf32, #tpu.memory_space<vmem>>, vector<128x128xf32>
      %cst_12 = arith.constant dense<0.000000e+00> : vector<128x128xf32>
      %18 = tpu.matmul %16, %17, %cst_12 {dimension_numbers = #tpu.dot_dimension_numbers<[1], [0], [0], [1], [0, 0, 1, 1], [], []>} : vector<128x128xf32>, vector<128x128xf32>, vector<128x128xf32> -> vector<128x128xf32>
      %c0_13 = arith.constant 0 : index
      %c0_14 = arith.constant 0 : index
      %19 = vector.load %arg5[%c0_13, %c0_14] : memref<1x128xf32, #tpu.memory_space<vmem>>, vector<1x128xf32>
      %20 = vector.broadcast %19 : vector<1x128xf32> to vector<128x128xf32>
      %21 = arith.addf %18, %20 : vector<128x128xf32>
      %c0_15 = arith.constant 0 : index
      %c0_16 = arith.constant 0 : index
      %22 = vector.load %arg6[%c0_15, %c0_16] : memref<128x128xf32, #tpu.memory_space<vmem>>, vector<128x128xf32>
      tpu.vector_store %arg6[%c0_15, %c0_16], %21 {strides = array<i32>} : memref<128x128xf32, #tpu.memory_space<vmem>>, vector<128x128xf32>,
    } else {
    }
    return
  }
  func.func @transform_0(%arg0: i32, %arg1: i32) -> (i32, i32) {
    %c0_i32 = arith.constant 0 : i32
    return %arg0, %arg1 : i32, i32
  }
  func.func @transform_1(%arg0: i32, %arg1: i32) -> (i32, i32) {
    %c0_i32 = arith.constant 0 : i32
    %c0_i32_0 = arith.constant 0 : i32
    %c0_i32_1 = arith.constant 0 : i32
    return %c0_i32, %c0_i32_0 : i32, i32
  }
  func.func @transform_2(%arg0: i32, %arg1: i32) -> (i32, i32) {
    %c0_i32 = arith.constant 0 : i32
    %c0_i32_0 = arith.constant 0 : i32
    %c0_i32_1 = arith.constant 0 : i32
    return %c0_i32, %c0_i32_0 : i32, i32
  }
  func.func @transform_3(%arg0: i32, %arg1: i32) -> (i32, i32) {
    %c0_i32 = arith.constant 0 : i32
    %c0_i32_0 = arith.constant 0 : i32
    %c0_i32_1 = arith.constant 0 : i32
    return %c0_i32, %c0_i32_0 : i32, i32
  }
  func.func @transform_4(%arg0: i32, %arg1: i32) -> (i32, i32) {
    %c0_i32 = arith.constant 0 : i32
    %c0_i32_0 = arith.constant 0 : i32
    return %arg0, %c0_i32 : i32, i32
  }
}

</mosaic_0001>

<bundles_post_ra>
// kernel: tpu_custom_call.1
= control target key start
LH: loop header
LB: loop body
LE: loop exit
PB: predicated region body
PF: predicated region fallthrough
CT: control target
= control target key end

     0   :  { %s1496_s0 = inlined_call_operand.hbm [shape: bf16[256,256], index: 0, kind: input, shape index: {}]   ;;  %s1497_s1 = inlined_call_operand.hbm [shape: f32[256,128], index: 1, kind: input, shape index: {}]   ;;  %s1498_s2 = inlined_call_operand.hbm [shape: f32[128,128], index: 2, kind: input, shape index: {}]   ;;  %s1499_s3 = inlined_call_operand.vmem [shape: f32[1,128], index: 3, kind: input, shape index: {}]   ;;  %s1500_s4 = inlined_call_operand.hbm [shape: f32[256,128], index: 4, kind: output, shape index: {}]  }
   0x1   :  { %1509 = sst [smem:[#allocation19_spill]] %s1497_s1 }
   0x2   :  { %1510 = sst [smem:[#allocation20_spill]] %s1498_s2 }
   0x3   :  { %1511 = sst [smem:[#allocation21_spill]] %s1499_s3 }
   0x4   :  { %1512 = sst [smem:[#allocation22_spill]] %s1500_s4 }
   0x5   :  { %9 = vsyncpa [#allocation4], 0 }
   0x6   :  { %11 = vsyncpa [#allocation4 + $0x1], 0 }
   0x7   :  { %12 = vsyncpa [#allocation7], 0 }
   0x8   :  { %13 = vsyncpa [#allocation5], 0 }
   0x9   :  { %15 = vsyncpa [#allocation5 + $0x1], 0  ;;  %s1240_s15 = smov 0   ;;  %s1242_s16 = smov 0  }
   0xa   :  { %s1244_s17 = smov 0   ;;  %s1246_s18 = smov 0  }
   0xb   :  { %s1248_s19 = smov 0   ;;  %s1250_s20 = smov 0  }
   0xc   :  { %s1252_s21 = smov 0   ;;  %s1254_s22 = smov 0  }
   0xd   :  { %s1256_s23 = smov 0   ;;  %s1258_s24 = smov 0  }
   0xe   :  { %s1260_s25 = smov 0  }
   0xf LB: > { %1513 = sst [smem:[#allocation13_spill]] %s1164_s15  ;;  %s720_s26 = sadd.s32 4294967295, %s1204_s25   ;;  %s1204_s25 = sphi %s1260_s25, %s21_s25   ;;  %s1200_s24 = sphi %s1258_s24, %s1546_s24   ;;  %s1196_s23 = sphi %s1256_s23, %s1545_s23   ;;  %s1192_s22 = sphi %s1254_s22, %s1544_s22   ;;  %s1188_s21 = sphi %s1252_s21, %s1543_s21   ;;  %s1184_s20 = sphi %s1250_s20, %s1542_s20   ;;  %s1180_s19 = sphi %s1248_s19, %s1541_s19   ;;  %s1176_s18 = sphi %s1246_s18, %s1540_s18   ;;  %s1172_s17 = sphi %s1244_s17, %s1539_s17   ;;  %s1168_s16 = sphi %s1242_s16, %s1538_s16   ;;  %s1164_s15 = sphi %s1240_s15, %s1537_s15  }
  0x10   : > { %1514 = sst [smem:[#allocation14_spill]] %s1188_s21  ;;  %s721_s27 = sadd.s32 4294967294, %s1204_s25  }
  0x11   : > { %1515 = sst [smem:[#allocation15_spill]] %s1192_s22  ;;  %p55_p0 = scmp.ne.s32.totalorder %s1180_s19, %s1176_s18 }
  0x12   : > { %p1296_p1 = scmp.eq.s32.totalorder %s720_s26, 0  ;;  %p141_p2 = scmp.ne.s32.totalorder %s1172_s17, %s1168_s16 }
  0x13   : > { %p142_p3 = scmp.eq.s32.totalorder %s720_s26, 3  ;;  %p147_p5 = scmp.ne.s32.totalorder %s1168_s16, %s1164_s15 }
  0x14   : > { %p1304_p4 = por %p1296_p1, %p55_p0  ;;  %p148_p7 = scmp.eq.s32.totalorder %s721_s27, 3 }
  0x15   : > { %p1310_p6 = por %p142_p3, %p141_p2  ;;  %p722_p8 = scmp.ge.s32.totalorder %s1204_s25, 1 }
  0x16   : > { %p155_p9 = scmp.lt.s32.totalorder %s1204_s25, 5  ;;  %p1316_p10 = por %p148_p7, %p147_p5 }
  0x17   : > { %s1518_s30 = scalar_select %p1310_p6, 1, 0 }
  0x18   : > { %s1520_s5 = scalar_select %p1316_p10, 1, 0 }
  0x19   : > { %1519 = sst [smem:[#allocation16_spill]] %s1518_s30  ;;  %p1320_p11 = pnand %p722_p8, %p155_p9 }
  0x1a   : > { %1521 = sst [smem:[#allocation17_spill]] %s1520_s5  ;;  %s1206_s10 = smov [#allocation6]  }
  0x1b   : > { %s1523_s1 = sld [smem:[#allocation19_spill]]  ;;  %p869_p12 = pneg %p1320_p11 }
  0x1c   : > { %s168_s11 = sshll.u32 %s1206_s10, 4  ;;  %s1524_s2 = sld [smem:[#allocation20_spill]]  ;;  %s169_s11 = int_to_ptr.vmem [resolvable:$true] %s168_s11 }
  0x1d   : > { %p870_p13 = pnand %p869_p12, %p1296_p1  ;;  %s1501_s18 = smov 128  }
  0x1e   : > { %s1208_s26 = smov 8   ;;  %s1209_s27 = smov [#allocation8]  }
  0x1f   : > { %s182_s7 = sshll.u32 %s1209_s27, 4  ;;  %s30_s8 = sadd.s32 1, %s1196_s23  ;;  %s183_s7 = int_to_ptr.vmem [resolvable:$true] %s182_s7 }
  0x20   : > { %p31_p0 = scmp.ge.s32.totalorder %s30_s8, 2  ;;  %s33_s10 = sadd.s32 1, %s1200_s24 }
  0x21   : > { %s166_s9 = sshll.u32 %s1523_s1, 4  ;;  %s42_s12 = sadd.s32 1, %s1184_s20  ;;  %s167_s9 = int_to_ptr.hbm [resolvable:$true] %s166_s9 }
  0x22   : > { %s180_s14 = sshll.u32 %s1524_s2, 4  ;;  %p49_p2 = scmp.ne.s32.totalorder %s1184_s20, %s1180_s19  ;;  %s181_s14 = int_to_ptr.hbm [resolvable:$true] %s180_s14 }
  0x23   : > { %872 = dma.hbm_to_vmem [thread:$0]  (!%p870_p13), %s167_s9, 4096, %s169_s11, [#allocation7], %s1501_s18, %s1501_s18, %s1208_s26  }
  0x24   : > { %875 = dma.hbm_to_vmem [thread:$0]  (!%p870_p13), %s181_s14, 2048, %s183_s7, [#allocation7], %s1501_s18, %s1501_s18, %s1208_s26  }
  0x25   : > { %s1548_s8 = smov (%p31_p0, %s30_s8), 0  ;;  %s1550_s10 = smov (!%p31_p0, %s33_s10), %s1200_s24 }
  0x26   : > { %1525 = sst [smem:[#allocation18_spill]] %s1548_s8  ;;  %s38_s9 = ssub.s32 %s1196_s23, %s1548_s8 }
  0x27   : > { %p50_p3 = scmp.eq.s32.totalorder %s1204_s25, 0  ;;  %p35_p5 = scmp.ge.s32.totalorder %s1550_s10, 2 }
  0x28   : > { %s131_s11 = sadd.s32 1, %s1172_s17  ;;  %p886_p8 = scmp.lt.s32.totalorder %s1204_s25, 4 }
  0x29   : > { %p1350_p7 = por %p50_p3, %p49_p2  ;;  %s1552_s10 = smov (%p35_p5, %s1550_s10), 0 }
  0x2a   : > { %s199_s14 = sand.u32 1, %s1184_s20   ;;  %s775_s26 = sshll.u32 %s1200_s24, 5 }
  0x2b   : > { %s37_s27 = ssub.s32 %s1200_s24, %s1552_s10  ;;  %s726_s18 = sshll.u32 %s199_s14, 6 }
  0x2c   : > { %s39_s7 = sor.u32 %s38_s9, %s37_s27  ;;  %p129_p9 = scmp.eq.s32.totalorder %s37_s27, 0 }
  0x2d   : > { %p40_p12 = scmp.eq.s32.totalorder %s39_s7, 0  ;;  %s208_s8 = sadd.s32 %s1196_s23, %s775_s26 }
  0x2e   : > { %s1362_s1 = scalar_select %p129_p9, %s1172_s17, %s131_s11  }
  0x2f   : > { %s1365_s2 = scalar_select %p40_p12, %s1184_s20, %s42_s12  }
  0x30   : > { %s729_s5 = sshll.u32 %s208_s8, 2  ;;  %s203_s15 = scalar_lea.vmem [#allocation3], %s726_s18 }
  0x31   : > { %s213_s4 = sshll.u32 %s203_s15, 4  ;;  %s210_s3 = scalar_lea.hbm %s1496_s0, %s729_s5  ;;  %s214_s4 = int_to_ptr.vmem [resolvable:$true] %s213_s4 }
  0x32   : > { %s211_s21 = sshll.u32 %s210_s3, 4  ;;  %p877_p13 = pnand %p886_p8, %p1350_p7  ;;  %s212_s21 = int_to_ptr.hbm [resolvable:$true] %s211_s21 }
  0x33   : > { %s200_s9 = scalar_lea.sflag [#allocation4], %s199_s14  ;;  %s1210_s27 = smov 64  }
  0x34   : > { %s1211_s11 = smov 4   ;;  %s1527_s7 = smov 128  }
  0x35   : > { %879 = dma.hbm_to_vmem [thread:$0]  (!%p877_p13), %s212_s21, 1024, %s214_s4, %s200_s9, %s1527_s7, %s1210_s27, %s1211_s11  }
  0x36   : > { %225 = sbr.rel (%p1320_p11) target bundleno = 509 (0x1fd), region = 36  ;;  %s227_s15 = sand.u32 (!%p1320_p11), 1, %s1180_s19  }
  0x37   : > { %s731_s18 = sshll.u32 (!%p1320_p11), %s227_s15, 6  ;;  %s228_s22 = scalar_lea.sflag (!%p1320_p11), [#allocation4], %s227_s15 }
  0x38   : > { %s1379_s30 = scalar_lea.vmem (!%p1320_p11), [#allocation3], %s731_s18 }
  0x3b   : > { %1151 = dma.done.wait (%p1304_p4), %s228_s22, 1024  }
  0x3c   : > { %1153 = vsyncadd (%p1304_p4), %s228_s22, 4294966272 }
  0x3d   : > { %1155 = dma.done.wait (%p1296_p1), [#allocation7], 6144  }
  0x3e   : > { %1157 = vsyncadd (%p1296_p1), [#allocation7], 4294961152  ;;  %s264_s3 = sand.u32 1, %s1168_s16   ;;  %s1528_s5 = sld [smem:[#allocation14_spill]] }
  0x3f   : > { %s734_s4 = sshll.u32 %s264_s3, 7 }
  0x40   : > { %s1392_s21 = scalar_lea.vmem [#allocation9], %s734_s4 }
  0x44   : > { %p735_p11 = scmp.ne.s32.totalorder %s1528_s5, 0 }
  0x46   : > { %272 = sbr.rel (%p735_p11) target bundleno = 92 (0x5c), region = 52 }
  0x4b   : > { %v1212_v0 = vmov 0.0  }
  0x4c   : > { %273 = vst [vmem:[#allocation2 + $0x30] sm:$0xff] %v1212_v0 }
  0x4d   : > { %274 = vst [vmem:[#allocation2] sm:$0xff] %v1212_v0 }
  0x4e   : > { %275 = vst [vmem:[#allocation2 + $0x58] sm:$0xff] %v1212_v0 }
  0x4f   : > { %276 = vst [vmem:[#allocation2 + $0x18] sm:$0xff] %v1212_v0 }
  0x50   : > { %277 = vst [vmem:[#allocation2 + $0x50] sm:$0xff] %v1212_v0 }
  0x51   : > { %278 = vst [vmem:[#allocation2 + $0x68] sm:$0xff] %v1212_v0 }
  0x52   : > { %279 = vst [vmem:[#allocation2 + $0x8] sm:$0xff] %v1212_v0 }
  0x53   : > { %280 = vst [vmem:[#allocation2 + $0x48] sm:$0xff] %v1212_v0 }
  0x54   : > { %281 = vst [vmem:[#allocation2 + $0x40] sm:$0xff] %v1212_v0 }
  0x55   : > { %282 = vst [vmem:[#allocation2 + $0x20] sm:$0xff] %v1212_v0 }
  0x56   : > { %283 = vst [vmem:[#allocation2 + $0x10] sm:$0xff] %v1212_v0 }
  0x57   : > { %284 = vst [vmem:[#allocation2 + $0x38] sm:$0xff] %v1212_v0 }
  0x58   : > { %285 = vst [vmem:[#allocation2 + $0x60] sm:$0xff] %v1212_v0 }
  0x59   : > { %286 = vst [vmem:[#allocation2 + $0x70] sm:$0xff] %v1212_v0 }
  0x5a   : > { %287 = vst [vmem:[#allocation2 + $0x78] sm:$0xff] %v1212_v0 }
  0x5b   : > { %288 = vst [vmem:[#allocation2 + $0x28] sm:$0xff] %v1212_v0 }
  0x5c PF: > { %s1529_s28 = sld [smem:[#allocation14_spill]]  ;;  %v776_v25 = vld [vmem:[%s1379_s30] sm:$0xff]  ;;  %v778_v26 = vld [vmem:[%s1379_s30 + $0x10] sm:$0xff]  ;;  %v777_v29 = vld [vmem:[%s1379_s30 + $0x8] sm:$0xff] }
  0x5d   : > { %v780_v27 = vld [vmem:[%s1379_s30 + $0x20] sm:$0xff]  ;;  %v782_v28 = vld [vmem:[%s1379_s30 + $0x30] sm:$0xff]  ;;  %v779_v30 = vld [vmem:[%s1379_s30 + $0x18] sm:$0xff] }
  0x5e   : > { %v781_v31 = vld [vmem:[%s1379_s30 + $0x28] sm:$0xff]  ;;  %v783_v32 = vld [vmem:[%s1379_s30 + $0x38] sm:$0xff]  ;;  %v307_v33 = vld [vmem:[#allocation2 + $0x30] sm:$0xff] }
  0x5f   : > { %v311_v34 = vld [vmem:[#allocation2 + $0x50] sm:$0xff]  ;;  %v315_v39 = vld [vmem:[#allocation2 + $0x40] sm:$0xff]  ;;  %v312_v42 = vld [vmem:[#allocation2 + $0x68] sm:$0xff] }
  0x60   : > { %v319_v40 = vld [vmem:[#allocation2 + $0x60] sm:$0xff]  ;;  %v320_v52 = vld [vmem:[#allocation2 + $0x70] sm:$0xff]  ;;  %v309_v53 = vld [vmem:[#allocation2 + $0x58] sm:$0xff] }
  0x61   : > { %v308_v41 = vld [vmem:[#allocation2] sm:$0xff]  ;;  %v313_v54 = vld [vmem:[#allocation2 + $0x8] sm:$0xff]  ;;  %v317_v63 = vld [vmem:[#allocation2 + $0x10] sm:$0xff] }
  0x62   : > { %s736_s29 = sshll.u32 %s1529_s28, 7  ;;  %v316_v51 = vld [vmem:[#allocation2 + $0x20] sm:$0xff]  ;;  %v321_v0 = vld [vmem:[#allocation2 + $0x78] sm:$0xff]  ;;  %p769_p1 = scmp.ne.s32.totalorder %s1529_s28, 1 }
  0x63   : > { %s1396_s6 = scalar_lea.vmem [#allocation6], %s736_s29  ;;  %s1530_s13 = sld [smem:[#allocation21_spill]] (!%p769_p1) }
  0x64   : > { %v305_v1 = vld [vmem:[%s1396_s6 + $0x70] sm:$0xff]  ;;  %v306_v2 = vld [vmem:[%s1396_s6 + $0x78] sm:$0xff]  ;;  %v303_v3 = vld [vmem:[%s1396_s6 + $0x60] sm:$0xff] }
  0x65   : > { %v346_v4 = vpack.c.bf16 %v306_v2, %v305_v1  ;;  %v304_v5 = vld [vmem:[%s1396_s6 + $0x68] sm:$0xff]  ;;  %v301_v7 = vld [vmem:[%s1396_s6 + $0x50] sm:$0xff]  ;;  %v302_v8 = vld [vmem:[%s1396_s6 + $0x58] sm:$0xff] }
  0x66   : > { %v345_v6 = vpack.c.bf16 %v304_v5, %v303_v3  ;;  %v344_v9 = vpack.c.bf16 %v302_v8, %v301_v7  ;;  %v299_v10 = vld [vmem:[%s1396_s6 + $0x40] sm:$0xff]  ;;  %v300_v11 = vld [vmem:[%s1396_s6 + $0x48] sm:$0xff]  ;;  %v297_v13 = vld [vmem:[%s1396_s6 + $0x30] sm:$0xff] }
  0x67   : > { %395 = vmatpush.bf16.msra.mxu0 %v346_v4  ;;  %785 = vmatpush.bf16.msra.mxu1 %v346_v4  ;;  %v343_v12 = vpack.c.bf16 %v300_v11, %v299_v10  ;;  %v298_v14 = vld [vmem:[%s1396_s6 + $0x38] sm:$0xff]  ;;  %v295_v16 = vld [vmem:[%s1396_s6 + $0x20] sm:$0xff]  ;;  %v296_v17 = vld [vmem:[%s1396_s6 + $0x28] sm:$0xff] }
  0x68   : > { %786 = vmatpush.bf16.msra.mxu2 %v346_v4  ;;  %787 = vmatpush.bf16.msra.mxu3 %v346_v4  ;;  %v342_v15 = vpack.c.bf16 %v298_v14, %v297_v13  ;;  %v341_v18 = vpack.c.bf16 %v296_v17, %v295_v16  ;;  %v293_v19 = vld [vmem:[%s1396_s6 + $0x10] sm:$0xff]  ;;  %v294_v20 = vld [vmem:[%s1396_s6 + $0x18] sm:$0xff]  ;;  %v291_v22 = vld [vmem:[%s1396_s6] sm:$0xff] }
  0x69   : > { %v340_v21 = vpack.c.bf16 %v294_v20, %v293_v19  ;;  %v292_v23 = vld [vmem:[%s1396_s6 + $0x8] sm:$0xff]  ;;  %v310_v1 = vld [vmem:[#allocation2 + $0x18] sm:$0xff] }
  0x6a   : > { %v339_v24 = vpack.c.bf16 %v292_v23, %v291_v22  ;;  %v314_v2 = vld [vmem:[#allocation2 + $0x48] sm:$0xff]  ;;  %v318_v11 = vld [vmem:[#allocation2 + $0x38] sm:$0xff] }
  0x6b   : > { %396 = vmatpush.bf16.msra.mxu0 %v345_v6  ;;  %788 = vmatpush.bf16.msra.mxu1 %v345_v6 }
  0x6c   : > { %789 = vmatpush.bf16.msra.mxu2 %v345_v6  ;;  %790 = vmatpush.bf16.msra.mxu3 %v345_v6 }
  0x6f   : > { %397 = vmatpush.bf16.msra.mxu0 %v344_v9  ;;  %791 = vmatpush.bf16.msra.mxu1 %v344_v9 }
  0x70   : > { %792 = vmatpush.bf16.msra.mxu2 %v344_v9  ;;  %793 = vmatpush.bf16.msra.mxu3 %v344_v9 }
  0x73   : > { %398 = vmatpush.bf16.msra.mxu0 %v343_v12  ;;  %794 = vmatpush.bf16.msra.mxu1 %v343_v12 }
  0x74   : > { %795 = vmatpush.bf16.msra.mxu2 %v343_v12  ;;  %796 = vmatpush.bf16.msra.mxu3 %v343_v12  ;;  %v322_v12 = vld [vmem:[#allocation2 + $0x28] sm:$0xff] }
  0x77   : > { %399 = vmatpush.bf16.msra.mxu0 %v342_v15  ;;  %797 = vmatpush.bf16.msra.mxu1 %v342_v15 }
  0x78   : > { %798 = vmatpush.bf16.msra.mxu2 %v342_v15  ;;  %799 = vmatpush.bf16.msra.mxu3 %v342_v15 }
  0x7b   : > { %400 = vmatpush.bf16.msra.mxu0 %v341_v18  ;;  %800 = vmatpush.bf16.msra.mxu1 %v341_v18 }
  0x7c   : > { %801 = vmatpush.bf16.msra.mxu2 %v341_v18  ;;  %802 = vmatpush.bf16.msra.mxu3 %v341_v18 }
  0x7f   : > { %401 = vmatpush.bf16.msra.mxu0 %v340_v21  ;;  %803 = vmatpush.bf16.msra.mxu1 %v340_v21 }
  0x80   : > { %804 = vmatpush.bf16.msra.mxu2 %v340_v21  ;;  %805 = vmatpush.bf16.msra.mxu3 %v340_v21 }
  0x83   : > { %402 = vmatpush.bf16.msra.mxu0 %v339_v24  ;;  %806 = vmatpush.bf16.msra.mxu1 %v339_v24 }
  0x84   : > { %807 = vmatpush.bf16.msra.mxu2 %v339_v24  ;;  %808 = vmatpush.bf16.msra.mxu3 %v339_v24 }
  0x86   : > { %403 = vmatmul.bf16.vlgmr.msra.gmra.mxu0 %v776_v25  ;;  %413 = vmatmul.bf16.vlgmr.msra.gmra.mxu1 %v778_v26 }
  0x87   : > { %423 = vmatmul.bf16.vlgmr.msra.gmra.mxu2 %v780_v27  ;;  %433 = vmatmul.bf16.vlgmr.msra.gmra.mxu3 %v782_v28 }
  0x96   : > { %408 = vmatmul.bf16.gmra.mxu0 %v777_v29  ;;  %418 = vmatmul.bf16.gmra.mxu1 %v779_v30 }
  0x97   : > { %428 = vmatmul.bf16.gmra.mxu2 %v781_v31  ;;  %438 = vmatmul.bf16.gmra.mxu3 %v783_v32 }
 0x103   : > { %v404_v35 = vpop.f32.mrf.mxu0  ;;  %v414_v36 = vpop.f32.mrf.mxu1 }
 0x104   : > { %v444_v37 = vadd.f32 %v404_v35, %v307_v33  ;;  %v448_v38 = vadd.f32 %v414_v36, %v311_v34 }
 0x106   : > { %460 = vst [vmem:[#allocation2 + $0x30] sm:$0xff] %v444_v37 }
 0x107   : > { %464 = vst [vmem:[#allocation2 + $0x50] sm:$0xff] %v448_v38 }
 0x10a   : > { %v424_v43 = vpop.f32.mrf.mxu2  ;;  %v434_v44 = vpop.f32.mrf.mxu3 }
 0x10b   : > { %v452_v45 = vadd.f32 %v424_v43, %v315_v39  ;;  %v456_v46 = vadd.f32 %v434_v44, %v319_v40  ;;  %v406_v47 = vpop.f32.mrf.mxu0  ;;  %v416_v48 = vpop.f32.mrf.mxu1 }
 0x10c   : > { %v445_v49 = vadd.f32 %v406_v47, %v308_v41  ;;  %v449_v50 = vadd.f32 %v416_v48, %v312_v42 }
 0x10d   : > { %468 = vst [vmem:[#allocation2 + $0x40] sm:$0xff] %v452_v45 }
 0x10e   : > { %472 = vst [vmem:[#allocation2 + $0x60] sm:$0xff] %v456_v46 }
 0x10f   : > { %461 = vst [vmem:[#allocation2] sm:$0xff] %v445_v49 }
 0x110   : > { %465 = vst [vmem:[#allocation2 + $0x68] sm:$0xff] %v449_v50 }
 0x112   : > { %v426_v55 = vpop.f32.mrf.mxu2  ;;  %v436_v56 = vpop.f32.mrf.mxu3 }
 0x113   : > { %v453_v57 = vadd.f32 %v426_v55, %v316_v51  ;;  %v457_v58 = vadd.f32 %v436_v56, %v320_v52  ;;  %v409_v59 = vpop.f32.mrf.mxu0  ;;  %v419_v60 = vpop.f32.mrf.mxu1 }
 0x114   : > { %v446_v61 = vadd.f32 %v409_v59, %v309_v53  ;;  %v450_v62 = vadd.f32 %v419_v60, %v313_v54 }
 0x115   : > { %469 = vst [vmem:[#allocation2 + $0x20] sm:$0xff] %v453_v57 }
 0x116   : > { %473 = vst [vmem:[#allocation2 + $0x70] sm:$0xff] %v457_v58 }
 0x117   : > { %462 = vst [vmem:[#allocation2 + $0x58] sm:$0xff] %v446_v61 }
 0x118   : > { %466 = vst [vmem:[#allocation2 + $0x8] sm:$0xff] %v450_v62 }
 0x11a   : > { %v429_v3 = vpop.f32.mrf.mxu2  ;;  %v439_v4 = vpop.f32.mrf.mxu3 }
 0x11b   : > { %v454_v5 = vadd.f32 %v429_v3, %v317_v63  ;;  %v458_v6 = vadd.f32 %v439_v4, %v321_v0  ;;  %v411_v7 = vpop.f32.mrf.mxu0  ;;  %v421_v8 = vpop.f32.mrf.mxu1 }
 0x11c   : > { %v447_v9 = vadd.f32 %v411_v7, %v310_v1  ;;  %v451_v10 = vadd.f32 %v421_v8, %v314_v2 }
 0x11d   : > { %470 = vst [vmem:[#allocation2 + $0x10] sm:$0xff] %v454_v5 }
 0x11e   : > { %474 = vst [vmem:[#allocation2 + $0x78] sm:$0xff] %v458_v6 }
 0x11f   : > { %463 = vst [vmem:[#allocation2 + $0x18] sm:$0xff] %v447_v9 }
 0x120   : > { %467 = vst [vmem:[#allocation2 + $0x48] sm:$0xff] %v451_v10 }
 0x122   : > { %v431_v13 = vpop.f32.mrf.mxu2  ;;  %v441_v14 = vpop.f32.mrf.mxu3  ;;  %479 = sbr.rel (%p769_p1) target bundleno = 487 (0x1e7), region = 56 }
 0x123   : > { %v455_v15 = vadd.f32 %v431_v13, %v318_v11  ;;  %v459_v16 = vadd.f32 %v441_v14, %v322_v12 }
 0x125   : > { %471 = vst [vmem:[#allocation2 + $0x38] sm:$0xff] %v455_v15 }
 0x126   : > { %475 = vst [vmem:[#allocation2 + $0x28] sm:$0xff] %v459_v16 }
 0x127   : > { %v511_v17 = vld [vmem:[#allocation8 + $0x78] sm:$0xff]  ;;  %v510_v18 = vld [vmem:[#allocation8 + $0x70] sm:$0xff]  ;;  %v509_v19 = vld [vmem:[#allocation8 + $0x68] sm:$0xff] }
 0x128   : > { %810 = vmatpush.msra.mxu2 %v511_v17  ;;  %811 = vmatpush.msra.mxu3 %v511_v17  ;;  %v508_v20 = vld [vmem:[#allocation8 + $0x60] sm:$0xff]  ;;  %v507_v21 = vld [vmem:[#allocation8 + $0x58] sm:$0xff]  ;;  %v506_v22 = vld [vmem:[#allocation8 + $0x50] sm:$0xff] }
 0x129   : > { %516 = vmatpush.msra.mxu0 %v511_v17  ;;  %809 = vmatpush.msra.mxu1 %v511_v17  ;;  %v505_v23 = vld [vmem:[#allocation8 + $0x48] sm:$0xff]  ;;  %v504_v24 = vld [vmem:[#allocation8 + $0x40] sm:$0xff]  ;;  %v503_v25 = vld [vmem:[#allocation8 + $0x38] sm:$0xff] }
 0x12a   : > { %813 = vmatpush.msra.mxu2 %v510_v18  ;;  %814 = vmatpush.msra.mxu3 %v510_v18  ;;  %v502_v26 = vld [vmem:[#allocation8 + $0x30] sm:$0xff]  ;;  %v501_v27 = vld [vmem:[#allocation8 + $0x28] sm:$0xff]  ;;  %v500_v28 = vld [vmem:[#allocation8 + $0x20] sm:$0xff] }
 0x12b   : > { %517 = vmatpush.msra.mxu0 %v510_v18  ;;  %812 = vmatpush.msra.mxu1 %v510_v18  ;;  %v499_v29 = vld [vmem:[#allocation8 + $0x18] sm:$0xff]  ;;  %v498_v30 = vld [vmem:[#allocation8 + $0x10] sm:$0xff]  ;;  %v497_v31 = vld [vmem:[#allocation8 + $0x8] sm:$0xff] }
 0x12c   : > { %816 = vmatpush.msra.mxu2 %v509_v19  ;;  %817 = vmatpush.msra.mxu3 %v509_v19  ;;  %v496_v32 = vld [vmem:[#allocation8] sm:$0xff]  ;;  %v480_v35 = vld [vmem:[#allocation2 + $0x30] sm:$0xff]  ;;  %v485_v40 = vld [vmem:[#allocation2 + $0x68] sm:$0xff] }
 0x12d   : > { %518 = vmatpush.msra.mxu0 %v509_v19  ;;  %815 = vmatpush.msra.mxu1 %v509_v19  ;;  %v488_v33 = vld [vmem:[#allocation2 + $0x40] sm:$0xff]  ;;  %v484_v36 = vld [vmem:[#allocation2 + $0x50] sm:$0xff]  ;;  %v494_v42 = vld [vmem:[#allocation2 + $0x78] sm:$0xff] }
 0x12e   : > { %819 = vmatpush.msra.mxu2 %v508_v20  ;;  %820 = vmatpush.msra.mxu3 %v508_v20  ;;  %v492_v34 = vld [vmem:[#allocation2 + $0x60] sm:$0xff]  ;;  %v493_v38 = vld [vmem:[#allocation2 + $0x70] sm:$0xff]  ;;  %v482_v43 = vld [vmem:[#allocation2 + $0x58] sm:$0xff] }
 0x12f   : > { %519 = vmatpush.msra.mxu0 %v508_v20  ;;  %818 = vmatpush.msra.mxu1 %v508_v20  ;;  %v489_v37 = vld [vmem:[#allocation2 + $0x20] sm:$0xff]  ;;  %v490_v41 = vld [vmem:[#allocation2 + $0x10] sm:$0xff]  ;;  %v486_v44 = vld [vmem:[#allocation2 + $0x8] sm:$0xff] }
 0x130   : > { %822 = vmatpush.msra.mxu2 %v507_v21  ;;  %823 = vmatpush.msra.mxu3 %v507_v21  ;;  %v481_v39 = vld [vmem:[#allocation2] sm:$0xff]  ;;  %v491_v45 = vld [vmem:[#allocation2 + $0x38] sm:$0xff]  ;;  %v495_v46 = vld [vmem:[#allocation2 + $0x28] sm:$0xff] }
 0x131   : > { %520 = vmatpush.msra.mxu0 %v507_v21  ;;  %821 = vmatpush.msra.mxu1 %v507_v21  ;;  %v483_v47 = vld [vmem:[#allocation2 + $0x18] sm:$0xff]  ;;  %v487_v48 = vld [vmem:[#allocation2 + $0x48] sm:$0xff]  ;;  %v987_v49 = vld [vmem:[%s1530_s13] ss:$0 sm:$0xff] }
 0x132   : > { %825 = vmatpush.msra.mxu2 %v506_v22  ;;  %826 = vmatpush.msra.mxu3 %v506_v22 }
 0x133   : > { %521 = vmatpush.msra.mxu0 %v506_v22  ;;  %824 = vmatpush.msra.mxu1 %v506_v22 }
 0x134   : > { %828 = vmatpush.msra.mxu2 %v505_v23  ;;  %829 = vmatpush.msra.mxu3 %v505_v23 }
 0x135   : > { %522 = vmatpush.msra.mxu0 %v505_v23  ;;  %827 = vmatpush.msra.mxu1 %v505_v23 }
 0x136   : > { %831 = vmatpush.msra.mxu2 %v504_v24  ;;  %832 = vmatpush.msra.mxu3 %v504_v24 }
 0x137   : > { %523 = vmatpush.msra.mxu0 %v504_v24  ;;  %830 = vmatpush.msra.mxu1 %v504_v24 }
 0x138   : > { %834 = vmatpush.msra.mxu2 %v503_v25  ;;  %835 = vmatpush.msra.mxu3 %v503_v25 }
 0x139   : > { %524 = vmatpush.msra.mxu0 %v503_v25  ;;  %833 = vmatpush.msra.mxu1 %v503_v25 }
 0x13a   : > { %837 = vmatpush.msra.mxu2 %v502_v26  ;;  %838 = vmatpush.msra.mxu3 %v502_v26 }
 0x13b   : > { %525 = vmatpush.msra.mxu0 %v502_v26  ;;  %836 = vmatpush.msra.mxu1 %v502_v26 }
 0x13c   : > { %840 = vmatpush.msra.mxu2 %v501_v27  ;;  %841 = vmatpush.msra.mxu3 %v501_v27 }
 0x13d   : > { %526 = vmatpush.msra.mxu0 %v501_v27  ;;  %839 = vmatpush.msra.mxu1 %v501_v27 }
 0x13e   : > { %843 = vmatpush.msra.mxu2 %v500_v28  ;;  %844 = vmatpush.msra.mxu3 %v500_v28 }
 0x13f   : > { %527 = vmatpush.msra.mxu0 %v500_v28  ;;  %842 = vmatpush.msra.mxu1 %v500_v28 }
 0x140   : > { %846 = vmatpush.msra.mxu2 %v499_v29  ;;  %847 = vmatpush.msra.mxu3 %v499_v29 }
 0x141   : > { %528 = vmatpush.msra.mxu0 %v499_v29  ;;  %845 = vmatpush.msra.mxu1 %v499_v29 }
 0x142   : > { %849 = vmatpush.msra.mxu2 %v498_v30  ;;  %850 = vmatpush.msra.mxu3 %v498_v30 }
 0x143   : > { %529 = vmatpush.msra.mxu0 %v498_v30  ;;  %848 = vmatpush.msra.mxu1 %v498_v30 }
 0x144   : > { %852 = vmatpush.msra.mxu2 %v497_v31  ;;  %853 = vmatpush.msra.mxu3 %v497_v31 }
 0x145   : > { %530 = vmatpush.msra.mxu0 %v497_v31  ;;  %851 = vmatpush.msra.mxu1 %v497_v31 }
 0x146   : > { %855 = vmatpush.msra.mxu2 %v496_v32  ;;  %856 = vmatpush.msra.mxu3 %v496_v32 }
 0x147   : > { %556 = vmatmul.f32.vlgmr.msra.gmra.mxu2 %v488_v33  ;;  %568 = vmatmul.f32.vlgmr.msra.gmra.mxu3 %v492_v34 }
 0x148   : > { %531 = vmatpush.msra.mxu0 %v496_v32  ;;  %854 = vmatpush.msra.mxu1 %v496_v32 }
 0x149   : > { %532 = vmatmul.f32.vlgmr.msra.gmra.mxu0 %v480_v35  ;;  %544 = vmatmul.f32.vlgmr.msra.gmra.mxu1 %v484_v36 }
 0x14f   : > { %559 = vmatmul.f32.gmra.mxu2 %v489_v37  ;;  %571 = vmatmul.f32.gmra.mxu3 %v493_v38 }
 0x151   : > { %535 = vmatmul.f32.gmra.mxu0 %v481_v39  ;;  %547 = vmatmul.f32.gmra.mxu1 %v485_v40 }
 0x157   : > { %562 = vmatmul.f32.gmra.mxu2 %v490_v41  ;;  %574 = vmatmul.f32.gmra.mxu3 %v494_v42 }
 0x159   : > { %538 = vmatmul.f32.gmra.mxu0 %v482_v43  ;;  %550 = vmatmul.f32.gmra.mxu1 %v486_v44 }
 0x15f   : > { %565 = vmatmul.f32.gmra.mxu2 %v491_v45  ;;  %577 = vmatmul.f32.gmra.mxu3 %v495_v46 }
 0x161   : > { %541 = vmatmul.f32.gmra.mxu0 %v483_v47  ;;  %553 = vmatmul.f32.gmra.mxu1 %v487_v48 }
 0x1c6   : > { %v533_v50 = vpop.f32.mrf.mxu0  ;;  %v545_v51 = vpop.f32.mrf.mxu1 }
 0x1c7   : > { %v534_v52 = vadd.f32 %v987_v49, %v533_v50  ;;  %v546_v53 = vadd.f32 %v987_v49, %v545_v51 }
 0x1c9   : > { %581 = vst [vmem:[%s1392_s21] sm:$0xff] %v534_v52 }
 0x1ca   : > { %585 = vst [vmem:[%s1392_s21 + $0x20] sm:$0xff] %v546_v53  ;;  %v557_v54 = vpop.f32.mrf.mxu2  ;;  %v569_v55 = vpop.f32.mrf.mxu3 }
 0x1cb   : > { %v558_v56 = vadd.f32 %v987_v49, %v557_v54  ;;  %v570_v57 = vadd.f32 %v987_v49, %v569_v55 }
 0x1cd   : > { %589 = vst [vmem:[%s1392_s21 + $0x40] sm:$0xff] %v558_v56 }
 0x1ce   : > { %593 = vst [vmem:[%s1392_s21 + $0x60] sm:$0xff] %v570_v57  ;;  %v536_v58 = vpop.f32.mrf.mxu0  ;;  %v548_v59 = vpop.f32.mrf.mxu1 }
 0x1cf   : > { %v537_v60 = vadd.f32 %v987_v49, %v536_v58  ;;  %v549_v61 = vadd.f32 %v987_v49, %v548_v59 }
 0x1d1   : > { %582 = vst [vmem:[%s1392_s21 + $0x8] sm:$0xff] %v537_v60 }
 0x1d2   : > { %586 = vst [vmem:[%s1392_s21 + $0x28] sm:$0xff] %v549_v61  ;;  %v560_v62 = vpop.f32.mrf.mxu2  ;;  %v572_v63 = vpop.f32.mrf.mxu3 }
 0x1d3   : > { %v561_v0 = vadd.f32 %v987_v49, %v560_v62  ;;  %v573_v1 = vadd.f32 %v987_v49, %v572_v63 }
 0x1d5   : > { %590 = vst [vmem:[%s1392_s21 + $0x48] sm:$0xff] %v561_v0 }
 0x1d6   : > { %594 = vst [vmem:[%s1392_s21 + $0x68] sm:$0xff] %v573_v1  ;;  %v539_v2 = vpop.f32.mrf.mxu0  ;;  %v551_v3 = vpop.f32.mrf.mxu1 }
 0x1d7   : > { %v540_v4 = vadd.f32 %v987_v49, %v539_v2  ;;  %v552_v5 = vadd.f32 %v987_v49, %v551_v3 }
 0x1d9   : > { %583 = vst [vmem:[%s1392_s21 + $0x10] sm:$0xff] %v540_v4 }
 0x1da   : > { %587 = vst [vmem:[%s1392_s21 + $0x30] sm:$0xff] %v552_v5  ;;  %v563_v6 = vpop.f32.mrf.mxu2  ;;  %v575_v7 = vpop.f32.mrf.mxu3 }
 0x1db   : > { %v564_v8 = vadd.f32 %v987_v49, %v563_v6  ;;  %v576_v9 = vadd.f32 %v987_v49, %v575_v7 }
 0x1dd   : > { %591 = vst [vmem:[%s1392_s21 + $0x50] sm:$0xff] %v564_v8 }
 0x1de   : > { %595 = vst [vmem:[%s1392_s21 + $0x70] sm:$0xff] %v576_v9  ;;  %v542_v10 = vpop.f32.mrf.mxu0  ;;  %v554_v11 = vpop.f32.mrf.mxu1 }
 0x1df   : > { %v543_v12 = vadd.f32 %v987_v49, %v542_v10  ;;  %v555_v13 = vadd.f32 %v987_v49, %v554_v11 }
 0x1e1   : > { %584 = vst [vmem:[%s1392_s21 + $0x18] sm:$0xff] %v543_v12 }
 0x1e2   : > { %588 = vst [vmem:[%s1392_s21 + $0x38] sm:$0xff] %v555_v13  ;;  %v566_v14 = vpop.f32.mrf.mxu2  ;;  %v578_v15 = vpop.f32.mrf.mxu3 }
 0x1e3   : > { %v567_v16 = vadd.f32 %v987_v49, %v566_v14  ;;  %v579_v17 = vadd.f32 %v987_v49, %v578_v15 }
 0x1e5   : > { %592 = vst [vmem:[%s1392_s21 + $0x58] sm:$0xff] %v567_v16 }
 0x1e6   : > { %596 = vst [vmem:[%s1392_s21 + $0x78] sm:$0xff] %v579_v17 }
 0x1e7 PF: > { %s1531_s14 = sld [smem:[#allocation15_spill]]  ;;  %s610_s18 = sshll.u32 %s1392_s21, 4  ;;  %s611_s18 = int_to_ptr.vmem [resolvable:$true] %s610_s18 }
 0x1e8   : > { %s1533_s7 = sld [smem:[#allocation22_spill]]  ;;  %s598_s30 = scalar_lea.sflag [#allocation5], %s264_s3 }
 0x1ed   : > { %s784_s9 = sshll.u32 %s1531_s14, 7 }
 0x1ee   : > { %s609_s15 = scalar_lea.hbm %s1533_s7, %s784_s9  ;;  %s1098_s6 = scalar_lea.hbm %s1533_s7, 256 }
 0x1ef   : > { %s612_s22 = sshll.u32 %s609_s15, 4  ;;  %s613_s22 = int_to_ptr.hbm [resolvable:$true] %s612_s22 }
 0x1f0   : > { %s1092_s4 = sshra.s32 %s613_s22, 4  ;;  %s1093_s4 = int_to_ptr.hbm [resolvable:$true] %s1092_s4 }
 0x1f1   : > { %s1094_s5 = scalar_lea.hbm %s1093_s4, 128  ;;  %p1099_p3 = scmp.lt.s32.totalorder %s1093_s4, %s1533_s7 }
 0x1f2   : > { %p1095_p4 = scmp.ne.s32.totalorder %s1093_s4, %s1094_s5  ;;  %p1100_p5 = scmp.lt.s32.totalorder %s1098_s6, %s1094_s5 }
 0x1f4   : > { %p1096_p0 = pnand %p1095_p4, %p1310_p6  ;;  %p1101_p7 = por %p1100_p5, %p1099_p3 }
 0x1f6   : > { %p1097_p2 = pneg %p1096_p0 }
 0x1f8   : > { %p1102_p8 = pnand %p1101_p7, %p1097_p2 }
 0x1fa   : > { %1105 = shalt.err (!%p1102_p8)
}
 0x1fb   : > { %s1213_s3 = smov 128   ;;  %s1214_s21 = smov 8  }
 0x1fc   : > { %867 = dma.vmem_to_hbm [thread:$0]  (%p1310_p6), %s611_s18, 2048, %s613_s22, %s598_s30, %s1213_s3, %s1213_s3, %s1214_s21  }
 0x1fd PF: > { %s1534_s13 = sld [smem:[#allocation13_spill]]  ;;  %p889_p9 = scmp.ge.s32.totalorder %s1204_s25, 2 }
 0x1ff   : > { %p881_p12 = pnand %p889_p9, %p1316_p10 }
 0x201   : > { %p882_p13 = pneg %p881_p12 }
 0x203   : > { %s627_s9 = sand.u32 1, %s1534_s13  }
 0x204   : > { %s628_s27 = scalar_lea.sflag [#allocation5], %s627_s9 }
 0x205   : > { %1159 = dma.done.wait (%p882_p13), %s628_s27, 2048  }
 0x206   : > { %1161 = vsyncadd (%p882_p13), %s628_s27, 4294965248  ;;  %s21_s25 = sadd.s32 1, %s1204_s25   ;;  %s1536_s26 = sld [smem:[#allocation18_spill]] }
 0x207   : > { %p18_p11 = scmp.ge.s32.totalorder %s21_s25, 6   ;;  %s1537_s15 = smov %s1168_s16 }
 0x208   : > { %s1538_s16 = smov %s1172_s17  ;;  %s1539_s17 = smov %s1362_s1 }
 0x209   : > { %s1540_s18 = smov %s1180_s19  ;;  %s1541_s19 = smov %s1184_s20 }
 0x20a   : > { %s1542_s20 = smov %s1365_s2  ;;  %s1543_s21 = smov %s1196_s23 }
 0x20b   : > { %s1544_s22 = smov %s1200_s24  ;;  %s1546_s24 = smov %s1552_s10 }
 0x20c   : > { %s1545_s23 = smov %s1536_s26  ;;  %20 = sbr.rel (!%p18_p11) target bundleno = 15 (0xf), region = 98 }
 0x211   :  { %634 = vsyncpa [#allocation4], 1 }
 0x212   :  { %636 = vsyncpa [#allocation4 + $0x1], 1 }
 0x213   :  { %637 = vsyncpa [#allocation7], 1 }
 0x214   :  { %638 = vsyncpa [#allocation5], 1 }
 0x215   :  { %640 = vsyncpa [#allocation5 + $0x1], 1 }

</bundles_post_ra>
